<compile_context>
chip_gen: v7x
topology: tpu7x:2x2x1
jax: 0.10.0
libtpu: 0.0.40
codegen_flags: <defaults>
</compile_context>

<pallas_src>
import math

import jax
import jax.numpy as jnp
from jax.experimental import pallas as pl
from jax.experimental.pallas import tpu as pltpu


def _cdiv(a: int, b: int) -> int:
    return -(-a // b)


def _default_block_bytes() -> int:
    """~8 MiB blocks on 128-MiB-VMEM chips (v5e/v6e), ~4 MiB otherwise (v7x
    has 64 MiB per TensorCore).  Conservative fallback if the query fails."""
    try:
        vmem = pltpu.get_tpu_info().vmem_capacity_bytes
        if vmem >= 96 * 1024 * 1024:
            return 8 * 1024 * 1024
    except Exception:
        pass
    return 4 * 1024 * 1024


def _loss_block(mean_ref, std_ref):
    mean = mean_ref[...].astype(jnp.float32)
    std = std_ref[...].astype(jnp.float32)
    return 1.0 + std - mean * mean - jnp.exp(std)  # VPU + EUP


def _make_kernel(d: int, td: int, nk: int):
    """Build the kernel body for static (D, feature-tile, num k-steps)."""
    if nk == 1:
        # Single feature block: td == d exactly, no tail, no accumulator.
        def kernel(mean_ref, std_ref, out_ref):
            loss = _loss_block(mean_ref, std_ref)
            out_ref[...] = (-0.5 * jnp.sum(loss, axis=-1, keepdims=True)
                            ).astype(out_ref.dtype)
        return kernel

    tail = (d % td) != 0          # static: last k block reads OOB lanes
    nfold = td // 128             # td is 128-aligned whenever nk > 1

    def kernel(mean_ref, std_ref, out_ref, acc_ref):
        k = pl.program_id(1)

        @pl.when(k == 0)
        def _():
            acc_ref[...] = jnp.zeros_like(acc_ref)

        loss = _loss_block(mean_ref, std_ref)
        if tail:
            # Mask OOB feature lanes (cheap VPU compare+select; only the last
            # k block actually has col >= d).
            col = k * td + jax.lax.broadcasted_iota(jnp.int32, loss.shape, 1)
            loss = jnp.where(col < d, loss, 0.0)

        # Lane-dense accumulation: fold the 128-wide column slices with plain
        # VPU adds; no XLU reduce and no masked 1-of-128-lane RMW per step.
        partial = loss[:, 0:128]
        for c in range(1, nfold):
            partial = partial + loss[:, c * 128:(c + 1) * 128]
        acc_ref[...] += partial

        @pl.when(k == nk - 1)
        def _():
            out_ref[...] = (-0.5 * jnp.sum(acc_ref[...], axis=-1, keepdims=True)
                            ).astype(out_ref.dtype)

    return kernel


def kldiv(mean: jax.Array, std: jax.Array, *, tile_b: int = 512,
          target_block_bytes: int | None = None,
          use_pallas: bool | None = None) -> jax.Array:
    """-0.5 * (1 + std - mean**2 - exp(std)).sum(-1)."""
    assert mean.shape == std.shape, "mean and std must have the same shape"
    orig_shape = mean.shape
    d = orig_shape[-1]
    lead = orig_shape[:-1]
    b = math.prod(lead) if lead else 1

    out_dtype = jnp.promote_types(mean.dtype, std.dtype)
    if not jnp.issubdtype(out_dtype, jnp.floating):
        out_dtype = jnp.float32

    if use_pallas is None:
        use_pallas = (b * d) >= 65536
    if not use_pallas or d == 0:
        # Tiny-input fallback: launch/step overhead would dominate the kernel.
        loss = (1.0 + std.astype(jnp.float32)
                - jnp.square(mean.astype(jnp.float32))
                - jnp.exp(std.astype(jnp.float32)))
        return (-0.5 * jnp.sum(loss, axis=-1)).astype(out_dtype)

    mean2 = mean.reshape(b, d)
    std2 = std.reshape(b, d)

    if target_block_bytes is None:
        target_block_bytes = _default_block_bytes()
    itemsize = max(jnp.dtype(mean.dtype).itemsize, jnp.dtype(std.dtype).itemsize)

    # Row tile: full batch if it fits (block dim == full array dim is always
    # legal); otherwise a multiple of 16 (bf16 sublane packing).  No halving
    # heuristic: on 1-TC chips it only shrinks DMA blocks for zero benefit.
    if b <= tile_b:
        tb = b
    else:
        tb = max(16, (int(tile_b) // 16) * 16)

    # Feature tile: byte-based so bf16 gets wider blocks; full D if it fits
    # (single k-step, no accumulator), else 128-lane aligned.
    max_td = max(128, target_block_bytes // (tb * itemsize))
    if d <= max_td:
        td = d
    else:
        td = max(128, (max_td // 128) * 128)

    nb = _cdiv(b, tb)
    nk = _cdiv(d, td)
    grid = (nb, nk)

    kernel = _make_kernel(d, td, nk)
    scratch = [pltpu.VMEM((tb, 128), jnp.float32)] if nk > 1 else []

    # VMEM budget derived from the chosen tile (2 inputs x double buffer +
    # output + accumulator), with ~1.5x headroom; safe on v7x's 64 MiB.
    block_bytes = tb * td * itemsize
    vmem_needed = 2 * 2 * block_bytes + 2 * tb * 4
    if nk > 1:
        vmem_needed += tb * 128 * 4
    vmem_limit = int(min(max(vmem_needed * 3 // 2 + (4 << 20), 16 << 20),
                         96 << 20))

    out = pl.pallas_call(
        kernel,
        out_shape=jax.ShapeDtypeStruct((b, 1), out_dtype),
        grid_spec=pltpu.PrefetchScalarGridSpec(
            num_scalar_prefetch=0,
            grid=grid,
            in_specs=[
                pl.BlockSpec((tb, td), lambda i, k: (i, k)),
                pl.BlockSpec((tb, td), lambda i, k: (i, k)),
            ],
            out_specs=pl.BlockSpec((tb, 1), lambda i, k: (i, 0)),
            scratch_shapes=scratch,
        ),
        compiler_params=pltpu.CompilerParams(
            dimension_semantics=("parallel", "arbitrary"),
            vmem_limit_bytes=vmem_limit,
        ),
    )(mean2, std2)

    out = out.reshape(b)
    return out.reshape(lead) if lead else out.reshape(())


def _reference(mean, std):
    m = mean.astype(jnp.float32)
    s = std.astype(jnp.float32)
    loss = 1.0 + s - m * m - jnp.exp(s)
    return -0.5 * jnp.sum(loss, axis=-1)


if __name__ == "__main__":
    key = jax.random.PRNGKey(0)
    k1, k2, k3, k4, k5, k6, k7, k8 = jax.random.split(key, 8)

    # Case 1: small VAE-style latent (batch=8, hidden=32), forced kernel path
    # (single full-D block, grid (1,1)).
    B, D = 8, 32
    mean = jax.random.normal(k1, (B, D), dtype=jnp.float32)
    std = jax.random.normal(k2, (B, D), dtype=jnp.float32)
    out = kldiv(mean, std, use_pallas=True)
    jax.block_until_ready(out)
    ref = _reference(mean, std)
    assert out.shape == (B,), out.shape
    assert jnp.allclose(out, ref, rtol=1e-5, atol=1e-5), (out, ref)

    # Case 2: ragged rows + ragged feature tail through the tiled-reduction
    # path (200 rows / 64-row blocks, 2000 features / 256-wide k-steps).
    B2, D2 = 200, 2000
    mean2 = jax.random.normal(k3, (B2, D2), dtype=jnp.float32)
    std2 = jax.random.normal(k4, (B2, D2), dtype=jnp.float32)
    out2 = kldiv(mean2, std2, tile_b=64, target_block_bytes=64 * 1024,
                 use_pallas=True)
    jax.block_until_ready(out2)
    ref2 = _reference(mean2, std2)
    assert out2.shape == (B2,), out2.shape
    assert jnp.allclose(out2, ref2, rtol=1e-4, atol=1e-2), (out2, ref2)

    # Case 3: leading-dims handling — auto path (tiny -> jnp fallback) and
    # forced kernel path on the same (2, 12, 40) input.
    mean3 = jax.random.normal(k5, (2, 12, 40), dtype=jnp.float32)
    std3 = jax.random.normal(k6, (2, 12, 40), dtype=jnp.float32)
    ref3 = _reference(mean3, std3)
    out3a = kldiv(mean3, std3)                    # auto -> fallback
    out3b = kldiv(mean3, std3, use_pallas=True)   # forced kernel
    jax.block_until_ready((out3a, out3b))
    assert out3a.shape == (2, 12) and out3b.shape == (2, 12)
    assert jnp.allclose(out3a, ref3, rtol=1e-5, atol=1e-5)
    assert jnp.allclose(out3b, ref3, rtol=1e-5, atol=1e-5)

    # Case 4: bf16 inputs (in-kernel f32 upcast, byte-based tile sizing).
    B4, D4 = 128, 512
    mean4 = jax.random.normal(k7, (B4, D4), dtype=jnp.bfloat16)
    std4 = jax.random.normal(k8, (B4, D4), dtype=jnp.bfloat16)
    out4 = kldiv(mean4, std4, use_pallas=True)
    jax.block_until_ready(out4)
    ref4 = _reference(mean4, std4)
    assert out4.shape == (B4,), out4.shape
    assert jnp.allclose(out4.astype(jnp.float32), ref4, rtol=2e-2, atol=8.0)

    print("KERNEL_OK")
</pallas_src>

<mosaic_0001>
module attributes {stable_mosaic.version = 11 : i64} {
  func.func @kernel(%arg0: i32, %arg1: i32, %arg2: memref<8x32xf32, #tpu.memory_space<vmem>>, %arg3: memref<8x32xf32, #tpu.memory_space<vmem>>, %arg4: memref<8x1xf32, #tpu.memory_space<vmem>>) attributes {dimension_semantics = [#tpu.dimension_semantics<parallel>, #tpu.dimension_semantics<arbitrary>], iteration_bounds = array<i64: 1, 1>, scalar_prefetch = 0 : i64, scratch_operands = 0 : i64, tpu.core_type = #tpu.core_type<tc>, window_params = [{transform_indices = @transform_0, window_bounds = array<i64: 8, 32>}, {transform_indices = @transform_1, window_bounds = array<i64: 8, 32>}, {transform_indices = @transform_2, window_bounds = array<i64: 8, 1>}]} {
    %c0 = arith.constant 0 : index
    %c0_0 = arith.constant 0 : index
    %0 = vector.load %arg2[%c0, %c0_0] : memref<8x32xf32, #tpu.memory_space<vmem>>, vector<8x32xf32>
    %c0_1 = arith.constant 0 : index
    %c0_2 = arith.constant 0 : index
    %1 = vector.load %arg3[%c0_1, %c0_2] : memref<8x32xf32, #tpu.memory_space<vmem>>, vector<8x32xf32>
    %cst = arith.constant 1.000000e+00 : f32
    %2 = vector.broadcast %cst : f32 to vector<8x32xf32>
    %3 = arith.addf %2, %1 : vector<8x32xf32>
    %4 = arith.mulf %0, %0 : vector<8x32xf32>
    %5 = arith.subf %3, %4 : vector<8x32xf32>
    %6 = math.exp %1 : vector<8x32xf32>
    %7 = arith.subf %5, %6 : vector<8x32xf32>
    %cst_3 = arith.constant dense<0.000000e+00> : vector<8xf32>
    %8 = vector.multi_reduction <add>, %7, %cst_3 [1] : vector<8x32xf32> to vector<8xf32>
    %9 = vector.shape_cast %8 : vector<8xf32> to vector<8x1xf32>
    %cst_4 = arith.constant -5.000000e-01 : f32
    %10 = vector.broadcast %cst_4 : f32 to vector<8x1xf32>
    %11 = arith.mulf %10, %9 : vector<8x1xf32>
    %c0_5 = arith.constant 0 : index
    %c0_6 = arith.constant 0 : index
    %12 = vector.load %arg4[%c0_5, %c0_6] : memref<8x1xf32, #tpu.memory_space<vmem>>, vector<8x1xf32>
    tpu.vector_store %arg4[%c0_5, %c0_6], %11 {strides = array<i32>} : memref<8x1xf32, #tpu.memory_space<vmem>>, vector<8x1xf32>,
    return
  }
  func.func @transform_0(%arg0: i32, %arg1: i32) -> (i32, i32) {
    %c0_i32 = arith.constant 0 : i32
    return %arg0, %arg1 : i32, i32
  }
  func.func @transform_1(%arg0: i32, %arg1: i32) -> (i32, i32) {
    %c0_i32 = arith.constant 0 : i32
    return %arg0, %arg1 : i32, i32
  }
  func.func @transform_2(%arg0: i32, %arg1: i32) -> (i32, i32) {
    %c0_i32 = arith.constant 0 : i32
    %c0_i32_0 = arith.constant 0 : i32
    return %arg0, %c0_i32 : i32, i32
  }
}

</mosaic_0001>

<bundles_post_ra>
// kernel: tpu_custom_call.1
= control target key start
LH: loop header
LB: loop body
LE: loop exit
PB: predicated region body
PF: predicated region fallthrough
CT: control target
= control target key end

     0   :  { %7 = vsyncpa [#allocation3], 0  ;;  %s152_s0 = inlined_call_operand.hbm [shape: f32[8,32], index: 0, kind: input, shape index: {}]   ;;  %s153_s1 = inlined_call_operand.hbm [shape: f32[8,32], index: 1, kind: input, shape index: {}]   ;;  %s154_s2 = inlined_call_operand.vmem [shape: f32[8,1], index: 2, kind: output, shape index: {}]  }
   0x1   :  { %8 = vsyncpa [#allocation5], 0  ;;  %s108_s9 = smov [#allocation2]   ;;  %s109_s11 = smov [#allocation4]  }
   0x2   :  { %s15_s10 = sshll.u32 %s108_s9, 4  ;;  %s25_s12 = sshll.u32 %s109_s11, 4  ;;  %s16_s10 = int_to_ptr.vmem [resolvable:$true] %s15_s10  ;;  %s26_s12 = int_to_ptr.vmem [resolvable:$true] %s25_s12 }
   0x3   :  { %s60_s15 = scalar_lea.hbm %s152_s0, 128 }
   0x4   :  { %p61_p0 = scmp.ne.s32.totalorder %s152_s0, %s60_s15  ;;  %p64_p1 = scmp.lt.u32.totalorder %s60_s15, %s152_s0 }
   0x6   :  { %p66_p2 = pnand %p64_p1, %p61_p0 }
   0x8   :  { %69 = shalt.err (!%p66_p2)
}
   0x9   :  { %s70_s20 = scalar_lea.vmem %s16_s10, 128  ;;  %p75_p4 = scmp.lt.s32.totalorder %s16_s10, %s16_s10 }
   0xa   :  { %p71_p3 = scmp.ne.s32.totalorder %s16_s10, %s70_s20  ;;  %p76_p5 = scmp.lt.s32.totalorder %s70_s20, %s70_s20 }
   0xc   :  { %p77_p6 = por %p76_p5, %p75_p4 }
   0xe   :  { %p78_p7 = pnand %p77_p6, %p71_p3 }
  0x10   :  { %81 = shalt.err (!%p78_p7)
}
  0x11   :  { %18 = dma.hbm_to_vmem [thread:$0]  %s152_s0, 128, %s16_s10, [#allocation3]  }
  0x12   :  { %s82_s25 = scalar_lea.hbm %s153_s1, 128 }
  0x13   :  { %p83_p8 = scmp.ne.s32.totalorder %s153_s1, %s82_s25  ;;  %p86_p9 = scmp.lt.u32.totalorder %s82_s25, %s153_s1 }
  0x15   :  { %p88_p10 = pnand %p86_p9, %p83_p8 }
  0x17   :  { %91 = shalt.err (!%p88_p10)
}
  0x18   :  { %s92_s30 = scalar_lea.vmem %s26_s12, 128  ;;  %p97_p12 = scmp.lt.s32.totalorder %s26_s12, %s26_s12 }
  0x19   :  { %p93_p11 = scmp.ne.s32.totalorder %s26_s12, %s92_s30  ;;  %p98_p13 = scmp.lt.s32.totalorder %s92_s30, %s92_s30 }
  0x1b   :  { %p99_p0 = por %p98_p13, %p97_p12 }
  0x1d   :  { %p100_p1 = pnand %p99_p0, %p93_p11 }
  0x1f   :  { %103 = shalt.err (!%p100_p1)
}
  0x20   :  { %28 = dma.hbm_to_vmem [thread:$0]  %s153_s1, 128, %s26_s12, [#allocation5]  }
  0x21   :  { %104 = dma.done.wait [#allocation3], 128  }
  0x22   :  { %105 = vsyncadd [#allocation3], 4294967168 }
  0x23   :  { %106 = dma.done.wait [#allocation5], 128  }
  0x24   :  { %107 = vsyncadd [#allocation5], 4294967168  ;;  %v36_v0 = vld [vmem:[#allocation4] sm:$0xff]  ;;  %v35_v2 = vld [vmem:[#allocation2] sm:$0xff]  ;;  %vm43_vm0 = vcmask 261120   ;;  %vm48_vm1 = vcmask 7168  }
  0x25   :  { %v40_v1 = vmul.f32 1.442695, %v36_v0  ;;  %v37_v3 = vadd.f32 1.0, %v36_v0  ;;  %v38_v4 = vmul.f32 %v35_v2, %v35_v2 }
  0x27   :  { %58 = vpow2.f32 %v40_v1  ;;  %v39_v5 = vsub.f32 %v37_v3, %v38_v4 }
  0x31   :  { %v59_v6 = vpop.eup %58 }
  0x32   :  { %v42_v7 = vsub.f32 %v39_v5, %v59_v6 }
  0x34   :  { %v44_v8 = vsel %vm43_vm0, %v42_v7, 0.0 }
  0x35   :  { %45 = vadd.xlane.f32.xlu0 %v44_v8 }
  0xc2   :  { %v46_v9 = vpop.xlane.xlu0 %45 }
  0xc3   :  { %v47_v10 = vmul.f32 -0.5, %v46_v9 }
  0xc5   :  { %49 = vst.msk [vmem:[%s154_s2] sm:$0xff] %vm48_vm1, %v47_v10 }
  0xc6   :  { %54 = vsyncpa [#allocation3], 1 }
  0xc7   :  { %55 = vsyncpa [#allocation5], 1 }

</bundles_post_ra>
